<compile_context>
chip_gen: v7x
topology: tpu7x:2x2x1
jax: 0.10.0
libtpu: 0.0.40
codegen_flags: <defaults>
</compile_context>

<pallas_src>
import functools

import jax
import jax.numpy as jnp
from jax.experimental import pallas as pl
from jax.experimental.pallas import tpu as pltpu


def _round_up(x, m):
    return ((x + m - 1) // m) * m


def _stiff_fourier_kernel(s_ref, params_ref, sel_ref, o_ref):
    # s_ref:      [TS, 1]        f32
    # params_ref: [3, DH]        f32   rows: A, w, phi (contiguously packed)
    # sel_ref:    [DH, OUT_PAD]  f32   0/1 per-dim reduction selector
    # o_ref:      [TS, OUT_PAD]  f32   lane d holds the sum for output dim d
    s = s_ref[...]                            # [TS, 1]
    a = params_ref[0:1, :]                    # [1, DH]
    w = params_ref[1:2, :]
    p = params_ref[2:3, :]

    # Dense elementwise / transcendental (EUP) hot path: [TS, DH].
    c = a * jnp.cos(w * s + p)

    # Per-dim harmonic reduction on the (otherwise idle) MXU.
    # precision=HIGHEST keeps the f32 operands exact (no bf16 demotion on v7x).
    o_ref[...] = jax.lax.dot_general(
        c, sel_ref[...],
        dimension_numbers=(((1,), (0,)), ((), ())),
        preferred_element_type=jnp.float32,
        precision=jax.lax.Precision.HIGHEST)


def pack_stiff_fourier_params(A, phi, w):
    """One-time packing of module parameters.

    A/phi/w: [dim, H, 2] f32.
    Returns (params [3, DH] f32, sel [DH, OUT_PAD] f32, dim).
    Harmonics are packed contiguously per dim (lanes [d*2H, (d+1)*2H)); only
    the total lane count is padded to a multiple of 128 (no wasted cos work).
    """
    dim, H, _ = A.shape
    two_h = 2 * H
    dh = _round_up(dim * two_h, 128)
    out_pad = _round_up(max(dim, 1), 128)

    def _flat(P):
        flat = jnp.concatenate([P[:, :, 0], P[:, :, 1]], axis=1)   # [dim, 2H]
        flat = flat.reshape(dim * two_h)
        return jnp.pad(flat, (0, dh - dim * two_h)).reshape(1, dh)

    params = jnp.concatenate(
        [_flat(A), _flat(w), _flat(phi)], axis=0).astype(jnp.float32)  # [3, DH]

    # 0/1 selector: column d sums lanes [d*2H, (d+1)*2H).  Padded lanes
    # (A == 0) never land in a valid column; padded columns are sliced off.
    lane = jax.lax.broadcasted_iota(jnp.int32, (dh, out_pad), 0)
    col = jax.lax.broadcasted_iota(jnp.int32, (dh, out_pad), 1)
    sel = ((lane >= col * two_h) & (lane < (col + 1) * two_h)).astype(jnp.float32)

    return params, sel, dim


def _pick_tile(S, dh):
    """Tile size along S: >=4 grid steps for mid/large S (megacore on v7x),
    capped at 2048 to amortize per-step overhead, and capped so the [ts, DH]
    f32 intermediate stays well under v5e's 16 MiB default scoped VMEM."""
    s_pad8 = _round_up(max(S, 1), 8)
    ts = max(256, _round_up((s_pad8 + 3) // 4, 8))
    ts = min(ts, 2048)
    vmem_cap = max(256, (8 * 1024 * 1024) // (dh * 4))   # ts*DH*4 <= 8 MiB
    ts = min(ts, _round_up(vmem_cap, 8) if vmem_cap >= 8 else 8)
    ts = min(ts, s_pad8)
    return ts


@functools.partial(jax.jit, static_argnames=("dim",))
def stiff_fourier_forward_packed(s, params, sel, dim):
    """s: scalar or [S] f32; params: [3, DH]; sel: [DH, OUT_PAD].
    Returns [max(S,1), dim] f32."""
    s_vec = jnp.atleast_1d(s).astype(jnp.float32)             # [S]
    S = s_vec.shape[0]
    dh = params.shape[1]
    out_pad = sel.shape[1]

    ts = _pick_tile(S, dh)
    s_pad = _round_up(S, ts)
    s2 = jnp.pad(s_vec.reshape(S, 1), ((0, s_pad - S), (0, 0)))

    out_full = pl.pallas_call(
        _stiff_fourier_kernel,
        out_shape=jax.ShapeDtypeStruct((s_pad, out_pad), jnp.float32),
        grid=(s_pad // ts,),
        in_specs=[
            pl.BlockSpec((ts, 1), lambda i: (i, 0)),          # s tile
            pl.BlockSpec((3, dh), lambda i: (0, 0)),          # params (resident)
            pl.BlockSpec((dh, out_pad), lambda i: (0, 0)),    # selector (resident)
        ],
        out_specs=pl.BlockSpec((ts, out_pad), lambda i: (i, 0)),
        compiler_params=pltpu.CompilerParams(
            dimension_semantics=("parallel",)),
    )(s2, params, sel)

    return out_full[:S, :dim]                                 # [S, dim]


def stiff_fourier_forward(s, A, phi, w):
    """Convenience wrapper: packs params then calls the kernel.  For the
    ODE-solver use case, call pack_stiff_fourier_params once and reuse."""
    params, sel, dim = pack_stiff_fourier_params(A, phi, w)
    return stiff_fourier_forward_packed(s, params, sel, dim)


def _ref_forward(s, A, phi, w):
    s_vec = jnp.atleast_1d(s).astype(jnp.float32)
    t0 = A[:, :, 0][None] * jnp.cos(w[:, :, 0][None] * s_vec[:, None, None]
                                    + phi[:, :, 0][None])
    t1 = A[:, :, 1][None] * jnp.cos(w[:, :, 1][None] * s_vec[:, None, None]
                                    + phi[:, :, 1][None])
    return (t0 + t1).sum(axis=-1)


if __name__ == "__main__":
    key = jax.random.PRNGKey(0)
    k_A, k_phi, k_w, k_s = jax.random.split(key, 4)

    dim = 2
    n_harmonics = 48  # deterministic stand-in for torch.randint(20, 100)

    A = jax.random.uniform(k_A, (dim, n_harmonics, 2), jnp.float32,
                           minval=-10.0, maxval=10.0)
    phi = jax.random.uniform(k_phi, (dim, n_harmonics, 2), jnp.float32,
                             minval=-1.0, maxval=1.0)
    w = jax.random.uniform(k_w, (dim, n_harmonics, 2), jnp.float32,
                           minval=-20.0, maxval=20.0)

    # One-time packing (reused across calls, as an ODE solver would).
    params, sel, d = pack_stiff_fourier_params(A, phi, w)

    # vector-s branch
    s = jax.random.uniform(k_s, (8,), jnp.float32, minval=0.0, maxval=1.0)
    out = stiff_fourier_forward_packed(s, params, sel, d)
    jax.block_until_ready(out)
    ref = _ref_forward(s, A, phi, w)
    assert out.shape == (8, dim), out.shape
    assert jnp.allclose(out, ref, atol=1e-3, rtol=1e-4), \
        float(jnp.max(jnp.abs(out - ref)))

    # scalar-s branch
    s0 = jnp.float32(0.37)
    out0 = stiff_fourier_forward_packed(s0, params, sel, d)
    jax.block_until_ready(out0)
    ref0 = _ref_forward(s0, A, phi, w)
    assert out0.shape == (1, dim), out0.shape
    assert jnp.allclose(out0, ref0, atol=1e-3, rtol=1e-4), \
        float(jnp.max(jnp.abs(out0 - ref0)))

    print("KERNEL_OK")
</pallas_src>

<mosaic_0001>
module attributes {stable_mosaic.version = 11 : i64} {
  func.func @_stiff_fourier_kernel(%arg0: i32, %arg1: memref<8x1xf32, #tpu.memory_space<vmem>>, %arg2: memref<3x256xf32, #tpu.memory_space<vmem>>, %arg3: memref<256x128xf32, #tpu.memory_space<vmem>>, %arg4: memref<8x128xf32, #tpu.memory_space<vmem>>) attributes {dimension_semantics = [#tpu.dimension_semantics<parallel>], iteration_bounds = array<i64: 1>, scalar_prefetch = 0 : i64, scratch_operands = 0 : i64, tpu.core_type = #tpu.core_type<tc>, window_params = [{transform_indices = @transform_0, window_bounds = array<i64: 8, 1>}, {pipeline_mode = #tpu.pipeline_mode<synchronous>, transform_indices = @transform_1, window_bounds = array<i64: 3, 256>}, {pipeline_mode = #tpu.pipeline_mode<synchronous>, transform_indices = @transform_2, window_bounds = array<i64: 256, 128>}, {transform_indices = @transform_3, window_bounds = array<i64: 8, 128>}]} {
    %c0 = arith.constant 0 : index
    %c0_0 = arith.constant 0 : index
    %0 = vector.load %arg1[%c0, %c0_0] : memref<8x1xf32, #tpu.memory_space<vmem>>, vector<8x1xf32>
    %c0_1 = arith.constant 0 : index
    %c0_2 = arith.constant 0 : index
    %1 = vector.load %arg2[%c0_1, %c0_2] : memref<3x256xf32, #tpu.memory_space<vmem>>, vector<1x256xf32>
    %c1 = arith.constant 1 : index
    %c0_3 = arith.constant 0 : index
    %2 = vector.load %arg2[%c1, %c0_3] : memref<3x256xf32, #tpu.memory_space<vmem>>, vector<1x256xf32>
    %c2 = arith.constant 2 : index
    %c0_4 = arith.constant 0 : index
    %3 = vector.load %arg2[%c2, %c0_4] : memref<3x256xf32, #tpu.memory_space<vmem>>, vector<1x256xf32>
    %4 = vector.broadcast %2 : vector<1x256xf32> to vector<8x256xf32>
    %5 = vector.broadcast %0 : vector<8x1xf32> to vector<8x256xf32>
    %6 = arith.mulf %4, %5 : vector<8x256xf32>
    %7 = vector.broadcast %3 : vector<1x256xf32> to vector<8x256xf32>
    %8 = arith.addf %6, %7 : vector<8x256xf32>
    %9 = math.cos %8 : vector<8x256xf32>
    %10 = vector.broadcast %1 : vector<1x256xf32> to vector<8x256xf32>
    %11 = arith.mulf %10, %9 : vector<8x256xf32>
    %c0_5 = arith.constant 0 : index
    %c0_6 = arith.constant 0 : index
    %12 = vector.load %arg3[%c0_5, %c0_6] : memref<256x128xf32, #tpu.memory_space<vmem>>, vector<256x128xf32>
    %cst = arith.constant dense<0.000000e+00> : vector<8x128xf32>
    %13 = tpu.matmul %11, %12, %cst {dimension_numbers = #tpu.dot_dimension_numbers<[1], [0], [0], [1], [0, 0, 1, 1], [], []>, precision = #tpu.contract_precision<fp32>} : vector<8x256xf32>, vector<256x128xf32>, vector<8x128xf32> -> vector<8x128xf32>
    %c0_7 = arith.constant 0 : index
    %c0_8 = arith.constant 0 : index
    %14 = vector.load %arg4[%c0_7, %c0_8] : memref<8x128xf32, #tpu.memory_space<vmem>>, vector<8x128xf32>
    tpu.vector_store %arg4[%c0_7, %c0_8], %13 {strides = array<i32>} : memref<8x128xf32, #tpu.memory_space<vmem>>, vector<8x128xf32>,
    return
  }
  func.func @transform_0(%arg0: i32) -> (i32, i32) {
    %c0_i32 = arith.constant 0 : i32
    %c0_i32_0 = arith.constant 0 : i32
    return %arg0, %c0_i32 : i32, i32
  }
  func.func @transform_1(%arg0: i32) -> (i32, i32) {
    %c0_i32 = arith.constant 0 : i32
    %c0_i32_0 = arith.constant 0 : i32
    %c0_i32_1 = arith.constant 0 : i32
    return %c0_i32, %c0_i32_0 : i32, i32
  }
  func.func @transform_2(%arg0: i32) -> (i32, i32) {
    %c0_i32 = arith.constant 0 : i32
    %c0_i32_0 = arith.constant 0 : i32
    %c0_i32_1 = arith.constant 0 : i32
    return %c0_i32, %c0_i32_0 : i32, i32
  }
  func.func @transform_3(%arg0: i32) -> (i32, i32) {
    %c0_i32 = arith.constant 0 : i32
    %c0_i32_0 = arith.constant 0 : i32
    return %arg0, %c0_i32 : i32, i32
  }
}

</mosaic_0001>

<bundles_post_ra>
// kernel: stiff_fourier_forward_packed.1
= control target key start
LH: loop header
LB: loop body
LE: loop exit
PB: predicated region body
PF: predicated region fallthrough
CT: control target
= control target key end

     0   :  { %8 = vsyncpa [#allocation3], 0  ;;  %s1647_s12 = smov [#allocation2]   ;;  %s2376_s0 = inlined_call_operand.vmem [shape: f32[8,1], index: 0, kind: input, shape index: {}]   ;;  %s2377_s1 = inlined_call_operand.vmem [shape: f32[3,256], index: 1, kind: input, shape index: {}]   ;;  %s2378_s2 = inlined_call_operand.hbm [shape: f32[256,128], index: 2, kind: input, shape index: {}]   ;;  %s2379_s3 = inlined_call_operand.vmem [shape: f32[8,128], index: 3, kind: output, shape index: {}]  }
   0x1   :  { %s18_s13 = sshll.u32 %s1647_s12, 4  ;;  %s1623_s16 = scalar_lea.hbm %s2378_s2, 4096  ;;  %s19_s13 = int_to_ptr.vmem [resolvable:$true] %s18_s13 }
   0x2   :  { %p1624_p0 = scmp.ne.s32.totalorder %s2378_s2, %s1623_s16  ;;  %p1627_p1 = scmp.lt.u32.totalorder %s1623_s16, %s2378_s2 }
   0x4   :  { %p1629_p2 = pnand %p1627_p1, %p1624_p0 }
   0x6   :  { %1632 = shalt.err (!%p1629_p2)
}
   0x7   :  { %s1633_s21 = scalar_lea.vmem %s19_s13, 4096  ;;  %p1638_p4 = scmp.lt.s32.totalorder %s19_s13, %s19_s13 }
   0x8   :  { %p1634_p3 = scmp.ne.s32.totalorder %s19_s13, %s1633_s21  ;;  %p1639_p5 = scmp.lt.s32.totalorder %s1633_s21, %s1633_s21 }
   0xa   :  { %p1640_p6 = por %p1639_p5, %p1638_p4 }
   0xc   :  { %p1641_p7 = pnand %p1640_p6, %p1634_p3 }
   0xe   :  { %1644 = shalt.err (!%p1641_p7)
}
   0xf   :  { %s1648_s22 = smov 128   ;;  %s1649_s23 = smov 8  }
  0x10   :  { %24 = dma.hbm_to_vmem [thread:$0]  %s2378_s2, 4096, %s19_s13, [#allocation3], %s1648_s22, %s1648_s22, %s1649_s23  }
  0x11   :  { %1645 = dma.done.wait [#allocation3], 4096  }
  0x12   :  { %1646 = vsyncadd [#allocation3], 4294963200  ;;  %v1650_v0 = vmov 0   ;;  %v28_v1 = vld [vmem:[%s2376_s0] sm:$0xff]  ;;  %v1694_v3 = vld [vmem:[#allocation2 + $0x88] sm:$0xff] }
  0x13   :  { %1614 = vset.pattern.permute.xlu0 %v1650_v0  ;;  %v1692_v2 = vld [vmem:[#allocation2 + $0x80] sm:$0xff]  ;;  %v368_v5 = vand.u32 4294901760, %v1694_v3  ;;  %v1700_v7 = vld [vmem:[#allocation2 + $0x8] sm:$0xff]  ;;  %v1724_v14 = vld [vmem:[#allocation2 + $0x90] sm:$0xff] }
  0x14   :  { %47 = vperm.xlu0 %1614, %v28_v1   ;;  %v365_v4 = vand.u32 4294901760, %v1692_v2  ;;  %v1698_v6 = vld [vmem:[#allocation2] sm:$0xff]  ;;  %v320_v9 = vand.u32 4294901760, %v1700_v7  ;;  %v1726_v15 = vld [vmem:[#allocation2 + $0x98] sm:$0xff]  ;;  %v371_v18 = vand.u32 4294901760, %v1724_v14  ;;  %v1732_v20 = vld [vmem:[#allocation2 + $0x10] sm:$0xff] }
  0x15   :  { %v317_v8 = vand.u32 4294901760, %v1698_v6  ;;  %v1712_v11 = vsub.f32 %v1694_v3, %v368_v5  ;;  %v374_v19 = vand.u32 4294901760, %v1726_v15  ;;  %v1734_v21 = vld [vmem:[#allocation2 + $0x18] sm:$0xff]  ;;  %v323_v24 = vand.u32 4294901760, %v1732_v20  ;;  %v1772_v34 = vld [vmem:[#allocation2 + $0xa0] sm:$0xff]  ;;  %v1776_v39 = vld [vmem:[#allocation2 + $0xa8] sm:$0xff] }
  0x16   :  { %v1707_v10 = vsub.f32 %v1692_v2, %v365_v4  ;;  %v1722_v13 = vsub.f32 %v1700_v7, %v320_v9  ;;  %v326_v25 = vand.u32 4294901760, %v1734_v21  ;;  %v1749_v28 = vsub.f32 %v1724_v14, %v371_v18  ;;  %v1780_v44 = vld [vmem:[#allocation2 + $0x20] sm:$0xff]  ;;  %v1789_v49 = vld [vmem:[#allocation2 + $0x28] sm:$0xff]  ;;  %v1798_v54 = vld [vmem:[#allocation2 + $0xb0] sm:$0xff] }
  0x17   :  { %2462 = vst [vmem:[#allocation6_spill] sm:$0xff] %v1712_v11  ;;  %v1717_v12 = vsub.f32 %v1698_v6, %v317_v8  ;;  %v2402_v17 = vand.u32 4294901760, %v1712_v11  ;;  %v1754_v29 = vsub.f32 %v1726_v15, %v374_v19  ;;  %v1765_v32 = vsub.f32 %v1732_v20, %v323_v24  ;;  %v1804_v59 = vld [vmem:[#allocation2 + $0xb8] sm:$0xff]  ;;  %v1810_v0 = vld [vmem:[#allocation2 + $0x30] sm:$0xff] }
  0x18   :  { %2461 = vst [vmem:[#allocation5_spill] sm:$0xff] %v1707_v10  ;;  %v2403_v16 = vand.u32 4294901760, %v1707_v10  ;;  %v2400_v23 = vand.u32 4294901760, %v1722_v13  ;;  %v1770_v33 = vsub.f32 %v1734_v21, %v326_v25  ;;  %v2398_v37 = vand.u32 4294901760, %v1749_v28 }
  0x19   :  { %v2401_v22 = vand.u32 4294901760, %v1717_v12  ;;  %v551_v27 = vsub.f32 %v1712_v11, %v2402_v17  ;;  %v2396_v38 = vand.u32 4294901760, %v1754_v29  ;;  %v2395_v42 = vand.u32 4294901760, %v1765_v32 }
  0x1a   :  { %v544_v26 = vsub.f32 %v1707_v10, %v2403_v16  ;;  %v439_v31 = vsub.f32 %v1722_v13, %v2400_v23  ;;  %v2394_v43 = vand.u32 4294901760, %v1770_v33  ;;  %v558_v46 = vsub.f32 %v1749_v28, %v2398_v37 }
  0x1b   :  { %v432_v30 = vsub.f32 %v1717_v12, %v2401_v22  ;;  %v552_v36 = vand.u32 4294901760, %v551_v27  ;;  %v565_v47 = vsub.f32 %v1754_v29, %v2396_v38  ;;  %v377_v48 = vand.u32 4294901760, %v1772_v34  ;;  %v314_v38 = vld [vmem:[#allocation2 + $0xf0] sm:$0xff] }
  0x1c   :  { %v545_v35 = vand.u32 4294901760, %v544_v26  ;;  %v440_v41 = vand.u32 4294901760, %v439_v31  ;;  %v446_v51 = vsub.f32 %v1765_v32, %v2395_v42  ;;  %v453_v52 = vsub.f32 %v1770_v33, %v2394_v43  ;;  %v1817_v31 = vld [vmem:[#allocation2 + $0x38] sm:$0xff] }
  0x1d   :  { %v433_v40 = vand.u32 4294901760, %v432_v30  ;;  %v380_v53 = vand.u32 4294901760, %v1776_v39  ;;  %v559_v55 = vand.u32 4294901760, %v558_v46  ;;  %v566_v56 = vand.u32 4294901760, %v565_v47 }
  0x1e   :  { %v1436_v45 = vpack.c.bf16 %v552_v36, %v545_v35  ;;  %v1801_v57 = vsub.f32 %v1772_v34, %v377_v48  ;;  %v329_v58 = vand.u32 4294901760, %v1780_v44  ;;  %v447_v60 = vand.u32 4294901760, %v446_v51 }
  0x1f   :  { %v1438_v50 = vpack.c.bf16 %v440_v41, %v433_v40  ;;  %v454_v61 = vand.u32 4294901760, %v453_v52  ;;  %v1807_v62 = vsub.f32 %v1776_v39, %v380_v53  ;;  %v332_v63 = vand.u32 4294901760, %v1789_v49 }
  0x20   :  { %1437 = vmatprep.subr.bf16.mxu1 %v1436_v45  ;;  %v1440_v1 = vpack.c.bf16 %v566_v56, %v559_v55  ;;  %v2392_v26 = vand.u32 4294901760, %v1801_v57  ;;  %v1814_v27 = vsub.f32 %v1780_v44, %v329_v58  ;;  %v383_v30 = vand.u32 4294901760, %v1798_v54 }
  0x21   :  { %1439 = vmatpush3.bf16.msra.mxu1 %v1438_v50  ;;  %v1442_v34 = vpack.c.bf16 %v454_v61, %v447_v60  ;;  %v2390_v35 = vand.u32 4294901760, %v1807_v62  ;;  %v1821_v36 = vsub.f32 %v1789_v49, %v332_v63  ;;  %v386_v39 = vand.u32 4294901760, %v1804_v59 }
  0x22   :  { %1441 = vmatprep.subr.bf16.mxu1 %v1440_v1  ;;  %v572_v40 = vsub.f32 %v1801_v57, %v2392_v26  ;;  %v2388_v41 = vand.u32 4294901760, %v1814_v27  ;;  %v1831_v44 = vsub.f32 %v1798_v54, %v383_v30  ;;  %v335_v45 = vand.u32 4294901760, %v1810_v0  ;;  %v1902_v1 = vld [vmem:[#allocation2 + $0x48] sm:$0xff] }
  0x23   :  { %v579_v46 = vsub.f32 %v1807_v62, %v2390_v35  ;;  %v2386_v47 = vand.u32 4294901760, %v1821_v36  ;;  %v1839_v49 = vsub.f32 %v1804_v59, %v386_v39  ;;  %v338_v50 = vand.u32 4294901760, %v1817_v31 }
  0x24   :  { %2463 = vst [vmem:[#allocation7_spill] sm:$0xff] %v1831_v44  ;;  %v1846_v51 = vpack.c.bf16 %v368_v5, %v365_v4  ;;  %v573_v52 = vand.u32 4294901760, %v572_v40  ;;  %v460_v55 = vsub.f32 %v1814_v27, %v2388_v41  ;;  %v2384_v56 = vand.u32 4294901760, %v1831_v44  ;;  %v1862_v4 = vld [vmem:[#allocation2 + $0xc0] sm:$0xff] }
  0x25   :  { %1443 = vmatpush3.bf16.msra.mxu1 %v1442_v34  ;;  %v580_v60 = vand.u32 4294901760, %v579_v46  ;;  %v1856_v59 = vpack.c.bf16 %v320_v9, %v317_v8  ;;  %v467_v2 = vsub.f32 %v1821_v36, %v2386_v47  ;;  %v2382_v3 = vand.u32 4294901760, %v1839_v49  ;;  %v1880_v9 = vld [vmem:[#allocation2 + $0xc8] sm:$0xff] }
  0x26   :  { %2464 = vst [vmem:[#allocation8_spill] sm:$0xff] %v1846_v51  ;;  %1405 = vmatprep.subr.bf16.mxu0 %v1846_v51  ;;  %v461_v5 = vand.u32 4294901760, %v460_v55  ;;  %v1869_v6 = vpack.c.bf16 %v374_v19, %v371_v18  ;;  %v586_v7 = vsub.f32 %v1831_v44, %v2384_v56  ;;  %v1878_v8 = vpack.c.bf16 %v326_v25, %v323_v24  ;;  %v1891_v19 = vld [vmem:[#allocation2 + $0x40] sm:$0xff] }
  0x27   :  { %v1444_v61 = vpack.c.bf16 %v580_v60, %v573_v52  ;;  %1407 = vmatpush3.bf16.msra.mxu0 %v1856_v59  ;;  %v468_v14 = vand.u32 4294901760, %v467_v2  ;;  %v593_v15 = vsub.f32 %v1839_v49, %v2382_v3  ;;  %v1889_v18 = vsub.f32 %v1810_v0, %v335_v45 }
  0x28   :  { %1409 = vmatprep.subr.bf16.mxu0 %v1869_v6  ;;  %v587_v20 = vand.u32 4294901760, %v586_v7  ;;  %v1897_v21 = vsub.f32 %v1817_v31, %v338_v50  ;;  %v1899_v24 = vpack.c.bf16 %v380_v53, %v377_v48  ;;  %v389_v25 = vand.u32 4294901760, %v1862_v4  ;;  %v1913_v53 = vld [vmem:[#allocation2 + $0xd0] sm:$0xff] }
  0x29   :  { %2465 = vst [vmem:[#allocation9_spill] sm:$0xff] %v1889_v18  ;;  %1445 = vmatprep.subr.bf16.mxu1 %v1444_v61  ;;  %v1446_v34 = vpack.c.bf16 %v468_v14, %v461_v5  ;;  %v594_v40 = vand.u32 4294901760, %v593_v15  ;;  %v2381_v46 = vand.u32 4294901760, %v1889_v18  ;;  %v392_v52 = vand.u32 4294901760, %v1880_v9  ;;  %v1923_v14 = vld [vmem:[#allocation2 + $0xd8] sm:$0xff] }
  0x2a   :  { %2466 = vst [vmem:[#allocation10_spill] sm:$0xff] %v1897_v21  ;;  %v2380_v55 = vand.u32 4294901760, %v1897_v21  ;;  %v1908_v60 = vsub.f32 %v1862_v4, %v389_v25  ;;  %v1910_v2 = vpack.c.bf16 %v332_v63, %v329_v58  ;;  %v341_v48 = vand.u32 4294901760, %v1891_v19 }
  0x2b   :  { %1447 = vmatpush3.bf16.msra.mxu1 %v1446_v34  ;;  %v1448_v7 = vpack.c.bf16 %v594_v40, %v587_v20  ;;  %1411 = vmatpush3.bf16.msra.mxu0 %v1878_v8  ;;  %v474_v5 = vsub.f32 %v1889_v18, %v2381_v46  ;;  %v1920_v61 = vsub.f32 %v1880_v9, %v392_v52  ;;  %v344_v4 = vand.u32 4294901760, %v1902_v1 }
  0x2c   :  { %2467 = vst [vmem:[#allocation11_spill] sm:$0xff] %v1908_v60  ;;  %v481_v58 = vsub.f32 %v1897_v21, %v2380_v55  ;;  %1413 = vmatprep.subr.bf16.mxu0 %v1899_v24  ;;  %v2383_v63 = vand.u32 4294901760, %v1908_v60  ;;  %v1931_v15 = vsub.f32 %v1891_v19, %v341_v48  ;;  %v1935_v20 = vpack.c.bf16 %v386_v39, %v383_v30  ;;  %v1947_v30 = vld [vmem:[#allocation2 + $0x50] sm:$0xff] }
  0x2d   :  { %2468 = vst [vmem:[#allocation12_spill] sm:$0xff] %v1920_v61  ;;  %1449 = vmatprep.subr.bf16.mxu1 %v1448_v7  ;;  %v475_v9 = vand.u32 4294901760, %v474_v5  ;;  %v2385_v34 = vand.u32 4294901760, %v1920_v61  ;;  %v1939_v40 = vsub.f32 %v1902_v1, %v344_v4  ;;  %v395_v55 = vand.u32 4294901760, %v1913_v53 }
  0x2e   :  { %2469 = vst [vmem:[#allocation13_spill] sm:$0xff] %v1931_v15  ;;  %v482_v46 = vand.u32 4294901760, %v481_v58  ;;  %v600_v3 = vsub.f32 %v1908_v60, %v2383_v63  ;;  %v2387_v19 = vand.u32 4294901760, %v1931_v15  ;;  %v398_v54 = vand.u32 4294901760, %v1923_v14  ;;  %v1963_v58 = vld [vmem:[#allocation2 + $0x58] sm:$0xff] }
  0x2f   :  { %2470 = vst [vmem:[#allocation14_spill] sm:$0xff] %v1939_v40  ;;  %v607_v39 = vsub.f32 %v1920_v61, %v2385_v34  ;;  %1415 = vmatpush3.bf16.msra.mxu0 %v1910_v2  ;;  %v2389_v1 = vand.u32 4294901760, %v1939_v40  ;;  %v1955_v7 = vsub.f32 %v1913_v53, %v395_v55  ;;  %v1961_v5 = vpack.c.bf16 %v338_v50, %v335_v45  ;;  %v1977_v50 = vld [vmem:[#allocation2 + $0xe0] sm:$0xff] }
  0x30   :  { %v1450_v63 = vpack.c.bf16 %v482_v46, %v475_v9  ;;  %v601_v56 = vand.u32 4294901760, %v600_v3  ;;  %v488_v34 = vsub.f32 %v1931_v15, %v2387_v19  ;;  %1417 = vmatprep.subr.bf16.mxu0 %v1935_v20  ;;  %v1970_v47 = vsub.f32 %v1923_v14, %v398_v54  ;;  %v1979_v3 = vld [vmem:[#allocation2 + $0xe8] sm:$0xff] }
  0x31   :  { %2471 = vst [vmem:[#allocation15_spill] sm:$0xff] %v1955_v7  ;;  %v608_v53 = vand.u32 4294901760, %v607_v39  ;;  %v495_v0 = vsub.f32 %v1939_v40, %v2389_v1  ;;  %v2391_v31 = vand.u32 4294901760, %v1955_v7  ;;  %v347_v45 = vand.u32 4294901760, %v1947_v30 }
  0x32   :  { %2472 = vst [vmem:[#allocation16_spill] sm:$0xff] %v1970_v47  ;;  %1451 = vmatpush3.bf16.msra.mxu1 %v1450_v63  ;;  %v489_v46 = vand.u32 4294901760, %v488_v34  ;;  %v2393_v9 = vand.u32 4294901760, %v1970_v47  ;;  %v350_v14 = vand.u32 4294901760, %v1963_v58  ;;  %v1983_v19 = vpack.c.bf16 %v392_v52, %v389_v25  ;;  %v2001_v52 = vld [vmem:[#allocation2 + $0x60] sm:$0xff] }
  0x33   :  { %v1452_v39 = vpack.c.bf16 %v608_v53, %v601_v56  ;;  %v496_v41 = vand.u32 4294901760, %v495_v0  ;;  %v614_v1 = vsub.f32 %v1955_v7, %v2391_v31  ;;  %1419 = vmatpush3.bf16.msra.mxu0 %v1961_v5  ;;  %v1990_v35 = vsub.f32 %v1947_v30, %v347_v45  ;;  %v2003_v53 = vld [vmem:[#allocation2 + $0x68] sm:$0xff] }
  0x34   :  { %v621_v63 = vsub.f32 %v1970_v47, %v2393_v9  ;;  %v1996_v34 = vsub.f32 %v1963_v58, %v350_v14  ;;  %1421 = vmatprep.subr.bf16.mxu0 %v1983_v19  ;;  %v401_v56 = vand.u32 4294901760, %v1977_v50  ;;  %v404_v25 = vand.u32 4294901760, %v1979_v3 }
  0x35   :  { %2473 = vst [vmem:[#allocation17_spill] sm:$0xff] %v1990_v35  ;;  %1453 = vmatprep.subr.bf16.mxu1 %v1452_v39  ;;  %v1454_v30 = vpack.c.bf16 %v496_v41, %v489_v46  ;;  %v615_v0 = vand.u32 4294901760, %v614_v1  ;;  %v2397_v31 = vand.u32 4294901760, %v1990_v35  ;;  %v2006_v26 = vpack.c.bf16 %v344_v4, %v341_v48  ;;  %v315_v46 = vld [vmem:[#allocation2 + $0xf8] sm:$0xff] }
  0x36   :  { %2474 = vst [vmem:[#allocation18_spill] sm:$0xff] %v1996_v34  ;;  %v622_v9 = vand.u32 4294901760, %v621_v63  ;;  %v2399_v58 = vand.u32 4294901760, %v1996_v34  ;;  %v2010_v43 = vsub.f32 %v1977_v50, %v401_v56  ;;  %v2013_v42 = vsub.f32 %v1979_v3, %v404_v25 }
  0x37   :  { %2475 = vst [vmem:[#allocation19_spill] sm:$0xff] %v2006_v26  ;;  %1455 = vmatpush3.bf16.msra.mxu1 %v1454_v30  ;;  %v502_v41 = vsub.f32 %v1990_v35, %v2397_v31  ;;  %1423 = vmatpush3.bf16.msra.mxu0 %v2006_v26  ;;  %v353_v48 = vand.u32 4294901760, %v2001_v52  ;;  %v356_v4 = vand.u32 4294901760, %v2003_v53  ;;  %v2021_v1 = vpack.c.bf16 %v398_v54, %v395_v55 }
  0x38   :  { %2476 = vst [vmem:[#allocation20_spill] sm:$0xff] %v2010_v43  ;;  %2477 = vst [vmem:[#allocation21_spill] sm:$0xff] %v2013_v42  ;;  %v1456_v50 = vpack.c.bf16 %v622_v9, %v615_v0  ;;  %v509_v3 = vsub.f32 %v1996_v34, %v2399_v58  ;;  %v2407_v39 = vand.u32 4294901760, %v2010_v43  ;;  %v2406_v63 = vand.u32 4294901760, %v2013_v42  ;;  %v298_v58 = vld [vmem:[#allocation2 + $0x70] sm:$0xff] }
  0x39   :  { %2478 = vst [vmem:[#allocation22_spill] sm:$0xff] %v2021_v1  ;;  %v503_v30 = vand.u32 4294901760, %v502_v41  ;;  %v2029_v31 = vsub.f32 %v2001_v52, %v353_v48  ;;  %v2032_v37 = vsub.f32 %v2003_v53, %v356_v4  ;;  %1425 = vmatprep.subr.bf16.mxu0 %v2021_v1  ;;  %v407_v55 = vand.u32 4294901760, %v314_v38 }
  0x3a   :  { %1457 = vmatprep.subr.bf16.mxu1 %v1456_v50  ;;  %v510_v54 = vand.u32 4294901760, %v509_v3  ;;  %v628_v9 = vsub.f32 %v2010_v43, %v2407_v39  ;;  %v635_v0 = vsub.f32 %v2013_v42, %v2406_v63  ;;  %v410_v41 = vand.u32 4294901760, %v315_v46  ;;  %v299_v50 = vld [vmem:[#allocation2 + $0x78] sm:$0xff] }
  0x3b   :  { %2479 = vst [vmem:[#allocation23_spill] sm:$0xff] %v2029_v31  ;;  %2480 = vst [vmem:[#allocation24_spill] sm:$0xff] %v2032_v37  ;;  %v2410_v52 = vand.u32 4294901760, %v2029_v31  ;;  %v2411_v53 = vand.u32 4294901760, %v2032_v37  ;;  %v2043_v23 = vsub.f32 %v314_v38, %v407_v55  ;;  %v2045_v22 = vpack.c.bf16 %v350_v14, %v347_v45 }
  0x3c   :  { %v1458_v3 = vpack.c.bf16 %v510_v54, %v503_v30  ;;  %v629_v17 = vand.u32 4294901760, %v628_v9  ;;  %v636_v16 = vand.u32 4294901760, %v635_v0  ;;  %v2047_v1 = vsub.f32 %v315_v46, %v410_v41 }
  0x3d   :  { %2481 = vst [vmem:[#allocation25_spill] sm:$0xff] %v2045_v22  ;;  %v516_v63 = vsub.f32 %v2029_v31, %v2410_v52  ;;  %v523_v39 = vsub.f32 %v2032_v37, %v2411_v53  ;;  %v2415_v26 = vand.u32 4294901760, %v2043_v23  ;;  %1427 = vmatpush3.bf16.msra.mxu0 %v2045_v22  ;;  %v359_v38 = vand.u32 4294901760, %v298_v58 }
  0x3e   :  { %1459 = vmatpush3.bf16.msra.mxu1 %v1458_v3  ;;  %v1460_v45 = vpack.c.bf16 %v636_v16, %v629_v17  ;;  %v2414_v14 = vand.u32 4294901760, %v2047_v1  ;;  %v362_v30 = vand.u32 4294901760, %v299_v50  ;;  %v2058_v46 = vpack.c.bf16 %v404_v25, %v401_v56 }
  0x3f   :  { %v517_v54 = vand.u32 4294901760, %v516_v63  ;;  %v524_v9 = vand.u32 4294901760, %v523_v39  ;;  %v642_v0 = vsub.f32 %v2043_v23, %v2415_v26  ;;  %v2063_v52 = vsub.f32 %v298_v58, %v359_v38 }
  0x40   :  { %2482 = vst [vmem:[#allocation26_spill] sm:$0xff] %v2058_v46  ;;  %1461 = vmatprep.subr.bf16.mxu1 %v1460_v45  ;;  %v649_v53 = vsub.f32 %v2047_v1, %v2414_v14  ;;  %v2068_v3 = vsub.f32 %v299_v50, %v362_v30  ;;  %1429 = vmatprep.subr.bf16.mxu0 %v2058_v46  ;;  %v1652_v37 = vmov 2475754826   ;;  %v1654_v43 = vmov 2102212464  }
  0x41   :  { %v1462_v16 = vpack.c.bf16 %v524_v9, %v517_v54  ;;  %v643_v17 = vand.u32 4294901760, %v642_v0  ;;  %v2413_v56 = vand.u32 4294901760, %v2063_v52  ;;  %v2072_v25 = vpack.c.bf16 %v356_v4, %v353_v48 }
  0x42   :  { %v650_v39 = vand.u32 4294901760, %v649_v53  ;;  %v2412_v63 = vand.u32 4294901760, %v2068_v3  ;;  %v2075_v58 = vpack.c.bf16 %v410_v41, %v407_v55  ;;  %v2081_v50 = vpack.c.bf16 %v362_v30, %v359_v38 }
  0x43   :  { %2483 = vst [vmem:[#allocation27_spill] sm:$0xff] %v2072_v25  ;;  %1463 = vmatpush3.bf16.msra.mxu1 %v1462_v16  ;;  %v530_v45 = vsub.f32 %v2063_v52, %v2413_v56  ;;  %1431 = vmatpush3.bf16.msra.mxu0 %v2072_v25  ;;  %v1468_v4 = vpack.c.bf16 %v1712_v11, %v1707_v10  ;;  %v35_v9 = vlaneseq  ;;  %v1655_v42 = vmov 920167782  }
  0x44   :  { %2484 = vst [vmem:[#allocation28_spill] sm:$0xff] %v2075_v58  ;;  %2485 = vst [vmem:[#allocation29_spill] sm:$0xff] %v2081_v50  ;;  %v1464_v54 = vpack.c.bf16 %v650_v39, %v643_v17  ;;  %v537_v48 = vsub.f32 %v2068_v3, %v2412_v63  ;;  %1433 = vmatprep.subr.bf16.mxu0 %v2075_v58  ;;  %v1656_v34 = vmov 1326507024  }
  0x45   :  { %v531_v41 = vand.u32 4294901760, %v530_v45  ;;  %v36_v39 = vshrl.u32 %v35_v9, 7 }
  0x46   :  { %1465 = vmatprep.subr.bf16.mxu1 %v1464_v54  ;;  %v538_v38 = vand.u32 4294901760, %v537_v48 }
  0x47   :  { %1435 = vmatpush3.bf16.msra.mxu0 %v2081_v50  ;;  %v2105_v48 = vsub.s32 0, %v36_v39 }
  0x48   :  { %v1466_v0 = vpack.c.bf16 %v538_v38, %v531_v41  ;;  %1469 = vmatprep.subr.bf16.mxu0 %v1468_v4  ;;  %v2107_v41 = vsub.s32 1, %v36_v39  ;;  %v1184_v4 = vld [vmem:[%s2377_s1 + $0x1] ss:$4 sm:$0x3] }
  0x49   :  { %v38_v54 = vrot.slane %v1184_v4, %v2105_v48 }
  0x4a   :  { %1467 = vmatpush3.bf16.msra.mxu1 %v1466_v0  ;;  %v1185_v0 = vld [vmem:[%s2377_s1 + $0x2] ss:$4 sm:$0x3]  ;;  %v42_v45 = vrot.slane %v1184_v4, %v2107_v41 }
  0x4b   :  { %1501 = vmatprep.subr.bf16.mxu1 %v1846_v51  ;;  %v56_v17 = vrot.slane %v1185_v0, %v2105_v48  ;;  %v60_v16 = vrot.slane %v1185_v0, %v2107_v41  ;;  %v1653_v51 = vmov 2131351028  }
  0x93   :  { %v48_v30 = vpop.permute.xlu0 %47 }
  0x94   :  { %v50_v9 = vmul.f32 %v48_v30, %v38_v54  ;;  %v51_v53 = vmul.f32 %v48_v30, %v42_v45 }
  0x96   :  { %v2129_v63 = vadd.f32 %v56_v17, %v50_v9  ;;  %v2131_v56 = vadd.f32 %v60_v16, %v51_v53  ;;  %v1651_v17 = vmov 683565275  }
  0x98   :  { %v2416_v4 = vand.u32 2147483647, %v2129_v63  ;;  %v68_v39 = vand.u32 2139095040, %v2129_v63  ;;  %v171_v14 = vand.u32 2139095040, %v2131_v56  ;;  %v2423_v45 = vand.u32 2147483647, %v2131_v56 }
  0x99   :  { %vm67_vm14 = vcmp.lt.s32.totalorder %v2129_v63, 0 }
  0x9a   :  { %v69_v0 = vshrl.u32 %v68_v39, 23  ;;  %v72_v30 = vand.u32 8388607, %v2416_v4  ;;  %v172_v54 = vshrl.u32 %v171_v14, 23  ;;  %v2147_v39 = vand.u32 8388607, %v2423_v45 }
  0x9c   :  { %v1186_v16 = vadd.s32 4294967169, %v69_v0  ;;  %v1190_v9 = vadd.s32 4294967169, %v172_v54  ;;  %v73_v26 = vor.u32 8388608, %v72_v30  ;;  %v176_v0 = vor.u32 8388608, %v2147_v39 }
  0x9e   :  { %v75_v55 = vadd.s32 1, %v1186_v16  ;;  %v178_v38 = vadd.s32 1, %v1190_v9  ;;  %v2149_v31 = vshll.u32 %v73_v26, 8 }
  0xa0   :  { %vm76_vm0 = vcmp.gt.s32.totalorder %v75_v55, 0  ;;  %vm179_vm1 = vcmp.gt.s32.totalorder %v178_v38, 0 }
  0xa1   :  { %v77_v4 = vsel %vm76_vm0, %v75_v55, 0  ;;  %v180_v10 = vsel %vm179_vm1, %v178_v38, 0  ;;  %vm170_vm0 = vcmp.lt.s32.totalorder %v2131_v56, 0 }
  0xa2   :  { %v78_v11 = vshrl.u32 %v77_v4, 5  ;;  %v79_v14 = vand.u32 31, %v77_v4  ;;  %v2152_v16 = vshrl.u32 %v180_v10, 5  ;;  %v182_v30 = vand.u32 31, %v180_v10 }
  0xa4   :  { %v80_v53 = vsub.s32 32, %v79_v14  ;;  %v82_v54 = vshll.u32 %v1651_v17, %v79_v14  ;;  %v85_v45 = vshll.u32 %v1652_v37, %v79_v14  ;;  %v88_v9 = vshll.u32 %v1653_v51, %v79_v14 }
  0xa5   :  { %v91_v55 = vshll.u32 %v1654_v43, %v79_v14  ;;  %v94_v50 = vshll.u32 %v1655_v42, %v79_v14  ;;  %vm97_vm2 = vcmp.lt.s32.totalorder %v78_v11, 1  ;;  %vm98_vm3 = vcmp.lt.s32.totalorder %v78_v11, 2 }
  0xa6   :  { %v83_v4 = vshrl.u32 %v1652_v37, %v80_v53  ;;  %v86_v38 = vshrl.u32 %v1653_v51, %v80_v53  ;;  %v89_v26 = vshrl.u32 %v1654_v43, %v80_v53  ;;  %v81_v35 = vshrl.u32 %v1651_v17, %v80_v53 }
  0xa7   :  { %v92_v39 = vshrl.u32 %v1655_v42, %v80_v53  ;;  %v95_v58 = vshrl.u32 %v1656_v34, %v80_v53  ;;  %v183_v25 = vsub.s32 32, %v182_v30  ;;  %vm99_vm4 = vcmp.lt.s32.totalorder %v78_v11, 3 }
  0xa8   :  { %v84_v7 = vor.u32 %v83_v4, %v82_v54  ;;  %v87_v47 = vor.u32 %v86_v38, %v85_v45  ;;  %v90_v10 = vor.u32 %v89_v26, %v88_v9  ;;  %vm100_vm5 = vcmp.lt.s32.totalorder %v78_v11, 4 }
  0xa9   :  { %v93_v15 = vor.u32 %v92_v39, %v91_v55  ;;  %v96_v40 = vor.u32 %v95_v58, %v94_v50  ;;  %v185_v53 = vshll.u32 %v1651_v17, %v182_v30  ;;  %v186_v45 = vshrl.u32 %v1652_v37, %v183_v25 }
  0xaa   :  { %v101_v46 = vsel %vm97_vm2, %v81_v35, %v84_v7  ;;  %v102_v14 = vsel %vm100_vm5, %v90_v10, 2102212464  ;;  %v105_v60 = vsel %vm97_vm2, %v84_v7, %v87_v47  ;;  %v109_v61 = vsel %vm97_vm2, %v87_v47, %v90_v10 }
  0xab   :  { %v103_v22 = vsel %vm99_vm4, %v87_v47, %v102_v14  ;;  %v106_v18 = vsel %vm100_vm5, %v93_v15, 920167782  ;;  %v110_v21 = vsel %vm100_vm5, %v96_v40, 1326507024  ;;  %v188_v9 = vshll.u32 %v1652_v37, %v182_v30 }
  0xac   :  { %v107_v44 = vsel %vm99_vm4, %v90_v10, %v106_v18  ;;  %v111_v54 = vsel %vm99_vm4, %v93_v15, %v110_v21  ;;  %v104_v55 = vsel %vm98_vm3, %v101_v46, %v103_v22  ;;  %v189_v35 = vshrl.u32 %v1653_v51, %v183_v25 }
  0xad   :  { %v108_v58 = vsel %vm98_vm3, %v105_v60, %v107_v44  ;;  %v112_v50 = vsel %vm98_vm3, %v109_v61, %v111_v54  ;;  %v187_v18 = vor.u32 %v186_v45, %v185_v53  ;;  %v191_v15 = vshll.u32 %v1653_v51, %v182_v30 }
  0xae   :  { %v2161_v4 = vmul.u32.u64.low %v2149_v31, %v112_v50  ;;  %v2162_v7 = vmul.u32.u64.high %v2149_v31, %v112_v50, %v2161_v4  ;;  %v2165_v47 = vmul.u32.u64.low %v2149_v31, %v108_v58  ;;  %v2166_v38 = vmul.u32.u64.high %v2149_v31, %v108_v58, %v2165_v47 }
  0xaf   :  { %v190_v21 = vor.u32 %v189_v35, %v188_v9  ;;  %v192_v37 = vshrl.u32 %v1654_v43, %v183_v25  ;;  %v194_v40 = vshll.u32 %v1654_v43, %v182_v30  ;;  %v195_v22 = vshrl.u32 %v1655_v42, %v183_v25 }
  0xb0   :  { %v198_v46 = vshrl.u32 %v1656_v34, %v183_v25  ;;  %v216_v44 = vshll.u32 %v176_v0, 8  ;;  %v120_v11 = vmul.u32 %v2149_v31, %v104_v55  ;;  %v184_v60 = vshrl.u32 %v1651_v17, %v183_v25 }
  0xb1   :  { %v193_v61 = vor.u32 %v192_v37, %v191_v15  ;;  %v197_v26 = vshll.u32 %v1655_v42, %v182_v30  ;;  %vm122_vm6 = vc.u32 %v2162_v7, %v2165_v47  ;;  %v123_v39 = vadd.s32 1, %v2166_v38 }
  0xb2   :  { %v196_v10 = vor.u32 %v195_v22, %v194_v40  ;;  %vm200_vm7 = vcmp.lt.s32.totalorder %v2152_v16, 1  ;;  %vm202_vm8 = vcmp.lt.s32.totalorder %v2152_v16, 3  ;;  %vm203_vm9 = vcmp.lt.s32.totalorder %v2152_v16, 4 }
  0xb3   :  { %v199_v14 = vor.u32 %v198_v46, %v197_v26  ;;  %v208_v43 = vsel %vm200_vm7, %v187_v18, %v190_v21  ;;  %v124_v51 = vsel %vm122_vm6, %v123_v39, %v2166_v38  ;;  %v205_v31 = vsel %vm203_vm9, %v193_v61, 2102212464 }
  0xb4   :  { %v209_v34 = vsel %vm203_vm9, %v196_v10, 920167782  ;;  %v212_v25 = vsel %vm200_vm7, %v190_v21, %v193_v61  ;;  %v125_v42 = vadd.s32 %v124_v51, %v120_v11  ;;  %vm201_vm10 = vcmp.lt.s32.totalorder %v2152_v16, 2 }
  0xb5   :  { %v210_v17 = vsel %vm202_vm8, %v193_v61, %v209_v34  ;;  %v213_v0 = vsel %vm203_vm9, %v199_v14, 1326507024  ;;  %v204_v30 = vsel %vm200_vm7, %v184_v60, %v187_v18  ;;  %v206_v53 = vsel %vm202_vm8, %v190_v21, %v205_v31 }
  0xb6   :  { %v211_v54 = vsel %vm201_vm10, %v208_v43, %v210_v17  ;;  %v214_v45 = vsel %vm202_vm8, %v196_v10, %v213_v0  ;;  %v126_v9 = vadd.s32 536870912, %v125_v42  ;;  %v207_v15 = vsel %vm201_vm10, %v204_v30, %v206_v53 }
  0xb7   :  { %v215_v55 = vsel %vm201_vm10, %v212_v25, %v214_v45  ;;  %v2178_v58 = vmul.u32.u64.low %v216_v44, %v211_v54  ;;  %v2179_v50 = vmul.u32.u64.high %v216_v44, %v211_v54, %v2178_v58  ;;  %v223_v16 = vmul.u32 %v216_v44, %v207_v15 }
  0xb8   :  { %v2181_v35 = vmul.u32.u64.low %v216_v44, %v215_v55  ;;  %v2182_v4 = vmul.u32.u64.high %v216_v44, %v215_v55, %v2181_v35  ;;  %v127_v38 = vshrl.u32 %v126_v9, 30  ;;  %v2486_v18 = vand.u32 4294901760, %v2043_v23 }
  0xb9   :  { %v226_v40 = vadd.s32 1, %v2179_v50  ;;  %v2487_v21 = vand.u32 4294901760, %v2047_v1  ;;  %v2488_v46 = vand.u32 4294901760, %v2063_v52  ;;  %v2489_v11 = vand.u32 4294901760, %v2068_v3 }
  0xba   :  { %v128_v37 = vshll.u32 %v127_v38, 30  ;;  %vm225_vm11 = vc.u32 %v2182_v4, %v2178_v58  ;;  %v121_v30 = vadd.s32 %v2165_v47, %v2162_v7  ;;  %vm157_vm5 = vweird.f32 %v2129_v63 }
  0xbb   :  { %v2190_v22 = vpack.c.bf16 %v2487_v21, %v2486_v18  ;;  %v2196_v60 = vpack.c.bf16 %v2489_v11, %v2488_v46  ;;  %v227_v26 = vsel %vm225_vm11, %v226_v40, %v2179_v50  ;;  %v224_v46 = vadd.s32 %v2178_v58, %v2182_v4 }
  0xbc   :  { %v129_v61 = vsub.s32 %v125_v42, %v128_v37  ;;  %v228_v39 = vadd.s32 %v227_v26, %v223_v16  ;;  %vm260_vm9 = vweird.f32 %v2131_v56 }
  0xbe   :  { %v131_v10 = vsub.s32 0, %v129_v61  ;;  %v229_v44 = vadd.s32 536870912, %v228_v39 }
  0xc0   :  { %v1187_v14 = vmin.u32 %v131_v10, %v129_v61  ;;  %v230_v43 = vshrl.u32 %v229_v44, 30 }
  0xc2   :  { %v133_v51 = vclz %v1187_v14  ;;  %v231_v31 = vshll.u32 %v230_v43, 30 }
  0xc4   :  { %v1188_v34 = vadd.s32 4294967294, %v133_v51  ;;  %v232_v25 = vsub.s32 %v228_v39, %v231_v31  ;;  %v2490_v51 = vand.u32 2147483647, %v2129_v63 }
  0xc6   :  { %vm1189_vm12 = vcmp.lt.s32.totalorder %v1188_v34, 0  ;;  %v234_v0 = vsub.s32 0, %v232_v25  ;;  %vm2205_vm15 = vcmp.le.f32.partialorder %v2490_v51, 0.7853982 }
  0xc7   :  { %v136_v17 = vsel %vm1189_vm12, 0, %v1188_v34 }
  0xc8   :  { %v137_v53 = vsub.s32 32, %v136_v17  ;;  %v141_v54 = vsub.s32 4294967266, %v136_v17  ;;  %v1191_v42 = vmin.u32 %v234_v0, %v232_v25  ;;  %v138_v45 = vshll.u32 %v129_v61, %v136_v17 }
  0xc9   :  { %v151_v17 = vsub.s32 4, %v127_v38 }
  0xca   :  { %v139_v9 = vshrl.u32 %v121_v30, %v137_v53  ;;  %v142_v55 = vadd.s32 127, %v141_v54  ;;  %v236_v50 = vclz %v1191_v42 }
  0xcb   :  { %v152_v30 = vsel %vm67_vm14, %v151_v17, %v127_v38 }
  0xcc   :  { %v140_v35 = vor.u32 %v139_v9, %v138_v45  ;;  %v143_v15 = vshll.u32 %v142_v55, 23  ;;  %v1192_v37 = vadd.s32 4294967294, %v236_v50  ;;  %v154_v54 = vsel %vm2205_vm15, 0, %v152_v30 }
  0xcd   :  { %v2493_v45 = vand.u32 2147483647, %v2131_v56  ;;  %v254_v50 = vsub.s32 4, %v230_v43  ;;  %v158_v38 = vand.u32 3, %v154_v54  ;;  %v2496_v9 = vpack.c.bf16 %v1722_v13, %v1717_v12 }
  0xce   :  { %v144_v40 = vor.u32 4788187, %v143_v15  ;;  %vm1193_vm13 = vcmp.lt.s32.totalorder %v1192_v37, 0  ;;  %v147_v18 = vcvt.s32.f32 %v140_v35 }
  0xcf   :  { %v239_v21 = vsel %vm1193_vm13, 0, %v1192_v37  ;;  %vm2217_vm1 = vcmp.le.f32.partialorder %v2493_v45, 0.7853982  ;;  %v29_v37 = vld [vmem:[%s2377_s1] ss:$4 sm:$0x3] }
  0xd0   :  { %v145_v16 = vand.u32 2147483647, %v144_v40  ;;  %v240_v11 = vsub.s32 32, %v239_v21  ;;  %v244_v26 = vsub.s32 4294967266, %v239_v21  ;;  %v241_v47 = vshll.u32 %v232_v25, %v239_v21 }
  0xd1   :  { %vm163_vm2 = vcmp.eq.s32.totalorder %v158_v38, 2  ;;  %vm160_vm3 = vcmp.eq.s32.totalorder %v158_v38, 0  ;;  %vm159_vm4 = vcmp.lt.s32.totalorder %v158_v38, 2  ;;  %v2500_v38 = vpack.c.bf16 %v1821_v36, %v1814_v27 }
  0xd2   :  { %v148_v7 = vmul.f32 %v147_v18, %v145_v16  ;;  %v242_v39 = vshrl.u32 %v224_v46, %v240_v11  ;;  %v245_v10 = vadd.s32 127, %v244_v26  ;;  %v255_v16 = vsel %vm170_vm0, %v254_v50, %v230_v43 }
  0xd3   :  { %v275_v11 = vrot.slane %v29_v37, %v2105_v48  ;;  %v257_v26 = vsel %vm2217_vm1, 0, %v255_v16  ;;  %v2498_v50 = vpack.c.bf16 %v1770_v33, %v1765_v32  ;;  %v2504_v16 = vld [vmem:[#allocation22_spill] sm:$0xff] }
  0xd4   :  { %v149_v61 = vxor.u32 2147483648, %v148_v7  ;;  %v243_v44 = vor.u32 %v242_v39, %v241_v47  ;;  %v246_v14 = vshll.u32 %v245_v10, 23  ;;  %v261_v10 = vand.u32 3, %v257_v26  ;;  %v2509_v26 = vld [vmem:[#allocation12_spill] sm:$0xff] }
  0xd6   :  { %v150_v34 = vsel %vm67_vm14, %v149_v61, %v148_v7  ;;  %v247_v4 = vor.u32 4788187, %v246_v14  ;;  %v250_v0 = vcvt.s32.f32 %v243_v44  ;;  %vm266_vm6 = vcmp.eq.s32.totalorder %v261_v10, 2 }
  0xd7   :  { %v153_v58 = vsel %vm2205_vm15, %v2129_v63, %v150_v34  ;;  %vm263_vm7 = vcmp.eq.s32.totalorder %v261_v10, 0  ;;  %v279_v34 = vrot.slane %v29_v37, %v2107_v41  ;;  %vm262_vm8 = vcmp.lt.s32.totalorder %v261_v10, 2  ;;  %v2502_v37 = vld [vmem:[#allocation7_spill] sm:$0xff]  ;;  %v2513_v10 = vld [vmem:[#allocation14_spill] sm:$0xff] }
  0xd8   :  { %1615 = vcosq.f32 %v153_v58  ;;  %v248_v25 = vand.u32 2147483647, %v247_v4 }
  0xd9   :  { %1617 = vsinq.f32 %v153_v58 }
  0xda   :  { %v251_v53 = vmul.f32 %v250_v0, %v248_v25 }
  0xdc   :  { %v252_v42 = vxor.u32 2147483648, %v251_v53 }
  0xde   :  { %v253_v55 = vsel %vm170_vm0, %v252_v42, %v251_v53 }
  0xdf   :  { %v256_v35 = vsel %vm2217_vm1, %v2131_v56, %v253_v55  ;;  %v2497_v55 = vpack.c.bf16 %v1754_v29, %v1749_v28 }
  0xe0   :  { %1619 = vcosq.f32 %v256_v35 }
  0xe1   :  { %1621 = vsinq.f32 %v256_v35  ;;  %v2499_v35 = vpack.c.bf16 %v1807_v62, %v1801_v57 }
  0xe2   :  { %v1616_v15 = vpop.eup %1615 }
  0xe3   :  { %v1618_v40 = vpop.eup %1617  ;;  %v164_v18 = vxor.u32 2147483648, %v1616_v15 }
  0xe4   :  { %v161_v21 = vxor.u32 2147483648, %v1618_v40 }
  0xe5   :  { %v165_v46 = vsel %vm163_vm2, %v164_v18, %v1618_v40  ;;  %v2503_v40 = vpack.c.bf16 %v1839_v49, %v2502_v37  ;;  %v2505_v18 = vld [vmem:[#allocation10_spill] sm:$0xff] }
  0xe6   :  { %v162_v7 = vsel %vm160_vm3, %v1616_v15, %v161_v21  ;;  %v2501_v15 = vld [vmem:[#allocation19_spill] sm:$0xff]  ;;  %v2506_v21 = vld [vmem:[#allocation9_spill] sm:$0xff] }
  0xe7   :  { %v166_v47 = vsel %vm159_vm4, %v162_v7, %v165_v46  ;;  %v2507_v46 = vpack.c.bf16 %v2505_v18, %v2506_v21  ;;  %v2510_v7 = vld [vmem:[#allocation11_spill] sm:$0xff] }
  0xe8   :  { %v167_v39 = vsel %vm157_vm5, nan, %v166_v47  ;;  %v2511_v47 = vpack.c.bf16 %v2509_v26, %v2510_v7 }
  0xe9   :  { %v282_v61 = vmul.f32 %v275_v11, %v167_v39  ;;  %v2508_v11 = vld [vmem:[#allocation25_spill] sm:$0xff]  ;;  %v2512_v39 = vld [vmem:[#allocation26_spill] sm:$0xff] }
  0xea   :  { %v1620_v44 = vpop.eup %1619 }
  0xeb   :  { %v2231_v43 = vand.u32 4294901760, %v282_v61  ;;  %v1622_v14 = vpop.eup %1621  ;;  %v267_v51 = vxor.u32 2147483648, %v1620_v44 }
  0xec   :  { %v264_v31 = vxor.u32 2147483648, %v1622_v14 }
  0xed   :  { %v268_v48 = vsel %vm266_vm6, %v267_v51, %v1622_v14  ;;  %v419_v58 = vsub.f32 %v282_v61, %v2231_v43  ;;  %v2514_v61 = vld [vmem:[#allocation13_spill] sm:$0xff]  ;;  %v2516_v14 = vld [vmem:[#allocation27_spill] sm:$0xff]  ;;  %v2517_v51 = vld [vmem:[#allocation16_spill] sm:$0xff] }
  0xee   :  { %v265_v17 = vsel %vm263_vm7, %v1620_v44, %v264_v31  ;;  %v2515_v44 = vpack.c.bf16 %v2513_v10, %v2514_v61  ;;  %v2518_v31 = vld [vmem:[#allocation15_spill] sm:$0xff] }
  0xef   :  { %v269_v63 = vsel %vm262_vm8, %v265_v17, %v268_v48  ;;  %v420_v0 = vand.u32 4294901760, %v419_v58  ;;  %v2519_v48 = vpack.c.bf16 %v2517_v51, %v2518_v31  ;;  %v2521_v17 = vld [vmem:[#allocation18_spill] sm:$0xff] }
  0xf0   :  { %v270_v4 = vsel %vm260_vm9, nan, %v269_v63  ;;  %v2522_v63 = vld [vmem:[#allocation17_spill] sm:$0xff] }
  0xf1   :  { %v283_v25 = vmul.f32 %v279_v34, %v270_v4  ;;  %v421_v54 = vsub.f32 %v419_v58, %v420_v0  ;;  %v2520_v34 = vld [vmem:[#allocation28_spill] sm:$0xff]  ;;  %v2523_v4 = vpack.c.bf16 %v2521_v17, %v2522_v63 }
  0xf3   :  { %v412_v30 = vand.u32 4294901760, %v283_v25  ;;  %v422_v45 = vand.u32 4294901760, %v421_v54  ;;  %v2526_v54 = vld [vmem:[#allocation20_spill] sm:$0xff] }
  0xf5   :  { %653 = vmatprep.mubr.f32.mxu1 %v412_v30  ;;  %v413_v53 = vsub.f32 %v283_v25, %v412_v30  ;;  %v2524_v25 = vld [vmem:[#allocation29_spill] sm:$0xff] }
  0xf6   :  { %655 = vmatmul.mubr.f32.vlgmr.msra.gmra.mrb[0].mxu1 %v2231_v43 }
  0xf7   :  { %1503 = vmatpush3.bf16.msra.mxu1 %v1856_v59  ;;  %v414_v42 = vand.u32 4294901760, %v413_v53 }
  0xf8   :  { %1505 = vmatprep.subr.bf16.mxu1 %v1869_v6 }
  0xf9   :  { %897 = vmatprep.mubr.f32.mxu1 %v414_v42  ;;  %v415_v41 = vsub.f32 %v413_v53, %v414_v42 }
  0xfb   :  { %1507 = vmatpush3.bf16.msra.mxu1 %v1878_v8  ;;  %v416_v56 = vand.u32 4294901760, %v415_v41  ;;  %v2528_v41 = vld [vmem:[#allocation8_spill] sm:$0xff] }
  0xfc   :  { %1509 = vmatprep.subr.bf16.mxu1 %v1899_v24 }
  0xfd   :  { %417 = vmatprep.mubr.f32.mxu0 %v416_v56  ;;  %v2530_v56 = vld [vmem:[#allocation23_spill] sm:$0xff] }
  0xfe   :  { %423 = vmatmul.mubr.f32.vlgmr.msra.gmra.mrb[0].mxu0 %v422_v45  ;;  %v2529_v45 = vld [vmem:[#allocation24_spill] sm:$0xff] }
  0xff   :  { %1471 = vmatpush3.bf16.msra.mxu0 %v2496_v9  ;;  %1511 = vmatpush3.bf16.msra.mxu1 %v1910_v2  ;;  %v2531_v9 = vpack.c.bf16 %v2529_v45, %v2530_v56 }
 0x100   :  { %790 = vmatprep.mubr.f32.mxu0 %v413_v53  ;;  %1473 = vmatprep.subr.bf16.mxu0 %v2497_v55  ;;  %v2525_v53 = vld [vmem:[#allocation21_spill] sm:$0xff]  ;;  %v2532_v55 = vpack.c.bf16 %v2047_v1, %v2043_v23  ;;  %v2540_v23 = vand.u32 4294901760, %v1749_v28  ;;  %v2541_v1 = vand.u32 4294901760, %v1754_v29  ;;  %v2546_v28 = vand.u32 4294901760, %v1814_v27 }
 0x101   :  { %1513 = vmatprep.subr.bf16.mxu1 %v1935_v20  ;;  %v2527_v42 = vpack.c.bf16 %v2525_v53, %v2526_v54  ;;  %v2547_v29 = vand.u32 4294901760, %v1821_v36  ;;  %v2552_v27 = vand.u32 4294901760, %v2510_v7  ;;  %v2553_v36 = vand.u32 4294901760, %v2509_v26 }
 0x102   :  { %v2560_v26 = vand.u32 4294901760, %v2526_v54 }
 0x103   :  { %1475 = vmatpush3.bf16.msra.mxu0 %v2498_v50  ;;  %1515 = vmatpush3.bf16.msra.mxu1 %v1961_v5  ;;  %v2533_v50 = vld [vmem:[#allocation5_spill] sm:$0xff] }
 0x104   :  { %1477 = vmatprep.subr.bf16.mxu0 %v2499_v35  ;;  %1517 = vmatprep.subr.bf16.mxu1 %v1983_v19  ;;  %v2534_v35 = vand.u32 4294901760, %v2533_v50 }
 0x107   :  { %1479 = vmatpush3.bf16.msra.mxu0 %v2500_v38  ;;  %1519 = vmatpush3.bf16.msra.mxu1 %v2501_v15  ;;  %v2535_v38 = vld [vmem:[#allocation6_spill] sm:$0xff] }
 0x108   :  { %1481 = vmatprep.subr.bf16.mxu0 %v2503_v40  ;;  %1521 = vmatprep.subr.bf16.mxu1 %v2504_v16  ;;  %v2536_v40 = vand.u32 4294901760, %v2535_v38 }
 0x10b   :  { %1483 = vmatpush3.bf16.msra.mxu0 %v2507_v46  ;;  %1523 = vmatpush3.bf16.msra.mxu1 %v2508_v11  ;;  %v1532_v46 = vpack.c.bf16 %v2536_v40, %v2534_v35 }
 0x10c   :  { %1485 = vmatprep.subr.bf16.mxu0 %v2511_v47  ;;  %1525 = vmatprep.subr.bf16.mxu1 %v2512_v39  ;;  %v2539_v47 = vand.u32 4294901760, %v1722_v13  ;;  %v2545_v13 = vand.u32 4294901760, %v1807_v62  ;;  %v2551_v62 = vand.u32 4294901760, %v2505_v18  ;;  %v2558_v18 = vand.u32 4294901760, %v2522_v63 }
 0x10f   :  { %1487 = vmatpush3.bf16.msra.mxu0 %v2515_v44  ;;  %1527 = vmatpush3.bf16.msra.mxu1 %v2516_v14 }
 0x110   :  { %1489 = vmatprep.subr.bf16.mxu0 %v2519_v48  ;;  %1529 = vmatprep.subr.bf16.mxu1 %v2520_v34  ;;  %v1536_v48 = vpack.c.bf16 %v2541_v1, %v2540_v23 }
 0x113   :  { %1491 = vmatpush3.bf16.msra.mxu0 %v2523_v4  ;;  %1531 = vmatpush3.bf16.msra.mxu1 %v2524_v25 }
 0x114   :  { %1493 = vmatprep.subr.bf16.mxu0 %v2527_v42  ;;  %1565 = vmatprep.subr.bf16.mxu1 %v2528_v41 }
 0x116   :  { %901 = vmatmul.mubr.f32.vlgmr.msra.gmra.mrb[2].mxu1 %v420_v0  ;;  %v2537_v0 = vpack.c.bf16 %v2068_v3, %v2063_v52  ;;  %v1542_v3 = vpack.c.bf16 %v2547_v29, %v2546_v28 }
 0x117   :  { %1495 = vmatpush3.bf16.msra.mxu0 %v2531_v9  ;;  %1567 = vmatpush3.bf16.msra.mxu1 %v1856_v59  ;;  %v2538_v59 = vand.u32 4294901760, %v1717_v12  ;;  %v2544_v12 = vand.u32 4294901760, %v1801_v57  ;;  %v2550_v57 = vand.u32 4294901760, %v2506_v21 }
 0x118   :  { %1171 = vmatprep.mubr.f32.mxu1 %v412_v30  ;;  %1497 = vmatprep.subr.bf16.mxu0 %v2532_v55 }
 0x119   :  { %1569 = vmatprep.subr.bf16.mxu1 %v1869_v6  ;;  %v1534_v44 = vpack.c.bf16 %v2539_v47, %v2538_v59  ;;  %v2542_v6 = vand.u32 4294901760, %v1765_v32  ;;  %v2548_v32 = vand.u32 4294901760, %v2502_v37 }
 0x11b   :  { %1499 = vmatpush3.bf16.msra.mxu0 %v2537_v0  ;;  %1571 = vmatpush3.bf16.msra.mxu1 %v1878_v8  ;;  %v2543_v8 = vand.u32 4294901760, %v1770_v33  ;;  %v2549_v33 = vand.u32 4294901760, %v1839_v49  ;;  %v2554_v49 = vand.u32 4294901760, %v2514_v61 }
 0x11c   :  { %1533 = vmatprep.subr.bf16.mxu0 %v1532_v46  ;;  %1573 = vmatprep.subr.bf16.mxu1 %v1899_v24  ;;  %v1540_v24 = vpack.c.bf16 %v2545_v13, %v2544_v12 }
 0x11d   :  { %v1538_v52 = vpack.c.bf16 %v2543_v8, %v2542_v6 }
 0x11e   :  { %793 = vmatmul.mubr.f32.vlgmr.msra.gmra.mrb[2].mxu0 %v419_v58 }
 0x11f   :  { %1535 = vmatpush3.bf16.msra.mxu0 %v1534_v44  ;;  %1067 = vmatprep.mubr.f32.mxu0 %v412_v30  ;;  %v2556_v30 = vand.u32 4294901760, %v2518_v31 }
 0x120   :  { %1575 = vmatpush3.bf16.msra.mxu1 %v1910_v2  ;;  %1537 = vmatprep.subr.bf16.mxu0 %v1536_v48  ;;  %v1544_v2 = vpack.c.bf16 %v2549_v33, %v2548_v32 }
 0x121   :  { %1577 = vmatprep.subr.bf16.mxu1 %v1935_v20  ;;  %v1546_v20 = vpack.c.bf16 %v2551_v62, %v2550_v57 }
 0x123   :  { %1539 = vmatpush3.bf16.msra.mxu0 %v1538_v52 }
 0x124   :  { %1579 = vmatpush3.bf16.msra.mxu1 %v1961_v5  ;;  %1541 = vmatprep.subr.bf16.mxu0 %v1540_v24  ;;  %v1548_v5 = vpack.c.bf16 %v2553_v36, %v2552_v27 }
 0x125   :  { %1581 = vmatprep.subr.bf16.mxu1 %v1983_v19  ;;  %v2555_v19 = vand.u32 4294901760, %v2513_v10  ;;  %v2562_v10 = vand.u32 4294901760, %v2530_v56 }
 0x127   :  { %1543 = vmatpush3.bf16.msra.mxu0 %v1542_v3  ;;  %v1550_v58 = vpack.c.bf16 %v2555_v19, %v2554_v49 }
 0x128   :  { %1583 = vmatpush3.bf16.msra.mxu1 %v2501_v15  ;;  %1545 = vmatprep.subr.bf16.mxu0 %v1544_v2  ;;  %v2557_v15 = vand.u32 4294901760, %v2517_v51 }
 0x129   :  { %1585 = vmatprep.subr.bf16.mxu1 %v2504_v16  ;;  %v2559_v16 = vand.u32 4294901760, %v2521_v17 }
 0x12a   :  { %v1552_v37 = vpack.c.bf16 %v2557_v15, %v2556_v30 }
 0x12b   :  { %1547 = vmatpush3.bf16.msra.mxu0 %v1546_v20  ;;  %v1554_v21 = vpack.c.bf16 %v2559_v16, %v2558_v18 }
 0x12c   :  { %1587 = vmatpush3.bf16.msra.mxu1 %v2508_v11  ;;  %1549 = vmatprep.subr.bf16.mxu0 %v1548_v5  ;;  %v2561_v11 = vand.u32 4294901760, %v2525_v53 }
 0x12d   :  { %1589 = vmatprep.subr.bf16.mxu1 %v2512_v39  ;;  %v2563_v39 = vand.u32 4294901760, %v2529_v45 }
 0x12e   :  { %v1556_v7 = vpack.c.bf16 %v2561_v11, %v2560_v26 }
 0x12f   :  { %1551 = vmatpush3.bf16.msra.mxu0 %v1550_v58  ;;  %v1558_v61 = vpack.c.bf16 %v2563_v39, %v2562_v10 }
 0x130   :  { %1591 = vmatpush3.bf16.msra.mxu1 %v2516_v14  ;;  %1553 = vmatprep.subr.bf16.mxu0 %v1552_v37 }
 0x131   :  { %1593 = vmatprep.subr.bf16.mxu1 %v2520_v34 }
 0x133   :  { %1555 = vmatpush3.bf16.msra.mxu0 %v1554_v21 }
 0x134   :  { %1595 = vmatpush3.bf16.msra.mxu1 %v2524_v25  ;;  %1557 = vmatprep.subr.bf16.mxu0 %v1556_v7 }
 0x137   :  { %1173 = vmatmul.mubr.f32.vlgmr.msra.gmra.mrb[4].mxu1 %v2231_v43  ;;  %1559 = vmatpush3.bf16.msra.mxu0 %v1558_v61 }
 0x138   :  { %1561 = vmatprep.subr.bf16.mxu0 %v2190_v22 }
 0x13b   :  { %1563 = vmatpush3.bf16.msra.mxu0 %v2196_v60 }
 0x13e   :  { %1069 = vmatmul.mubr.f32.vlgmr.msra.gmra.mrb[4].mxu0 %v2231_v43 }
 0x1c9   :  { %v1261_v14 = vpop.f32.mrb[0].mxu1 }
 0x1ca   :  { %v1262_v51 = vpop.f32.mrb[1].mxu1 }
 0x1cb   :  { %v1263_v31 = vadd.f32 %v1262_v51, %v1261_v14 }
 0x1d1   :  { %v1226_v34 = vpop.f32.mrb[0].mxu0 }
 0x1d2   :  { %v1227_v17 = vpop.f32.mrb[1].mxu0 }
 0x1d3   :  { %v1228_v63 = vadd.f32 %v1227_v17, %v1226_v34 }
 0x1d5   :  { %v657_v4 = vadd.f32 %v1263_v31, %v1228_v63 }
 0x1e9   :  { %v1331_v53 = vpop.f32.mrb[2].mxu1 }
 0x1ea   :  { %v1332_v54 = vpop.f32.mrb[3].mxu1 }
 0x1eb   :  { %v1333_v25 = vadd.f32 %v1332_v54, %v1331_v53 }
 0x1f1   :  { %v1296_v42 = vpop.f32.mrb[2].mxu0 }
 0x1f2   :  { %v1297_v41 = vpop.f32.mrb[3].mxu0 }
 0x1f3   :  { %v1298_v45 = vadd.f32 %v1297_v41, %v1296_v42 }
 0x1f5   :  { %v795_v56 = vadd.f32 %v1298_v45, %v657_v4 }
 0x1f7   :  { %v903_v9 = vadd.f32 %v1333_v25, %v795_v56 }
 0x20a   :  { %v1401_v22 = vpop.f32.mrb[4].mxu1 }
 0x20b   :  { %v1402_v55 = vpop.f32.mrb[5].mxu1 }
 0x20c   :  { %v1403_v60 = vadd.f32 %v1402_v55, %v1401_v22 }
 0x211   :  { %v1366_v50 = vpop.f32.mrb[4].mxu0 }
 0x212   :  { %v1367_v43 = vpop.f32.mrb[5].mxu0 }
 0x213   :  { %v1368_v35 = vadd.f32 %v1367_v43, %v1366_v50 }
 0x215   :  { %v1071_v38 = vadd.f32 %v1368_v35, %v903_v9 }
 0x217   :  { %v1175_v40 = vadd.f32 %v1403_v60, %v1071_v38 }
 0x219   :  { %1178 = vst [vmem:[%s2379_s3] sm:$0xff] %v1175_v40 }
 0x21a   :  { %1183 = vsyncpa [#allocation3], 1 }

</bundles_post_ra>
